<compile_context>
chip_gen: v6e
topology: v6e:2x2x1
jax: 0.10.0
libtpu: 0.0.40
codegen_flags: <defaults>
</compile_context>

<pallas_src>
import functools

import jax
import jax.numpy as jnp
import numpy as np
from jax.experimental import pallas as pl
from jax.experimental.pallas import tpu as pltpu


# ----------------------------------------------------------------------------
# Kernels
# ----------------------------------------------------------------------------
def embed_kernel(tok_ref, emb_ref, pos_ref, out_ref, *, inv_sqrt_d):
    # One token per grid step; emb_ref is the gathered (1, 1, D) embedding row.
    del tok_ref  # only consumed by the index_maps (scalar prefetch)
    row = emb_ref[...].astype(jnp.float32) * inv_sqrt_d + pos_ref[...]
    out_ref[0] = row.astype(out_ref.dtype)


def mha_core_kernel(x_ref, pad_ref, w_ref, b_ref, out_ref, *, d_head):
    # One (batch, head) pair per grid step.
    x = x_ref[0]                                                     # (S, D) bf16
    S = x.shape[0]

    # Fused Q/K/V projection for this head: a single (D, 3*d_head) MXU matmul.
    qkv = jnp.dot(x, w_ref[0], preferred_element_type=jnp.float32) + b_ref[0]
    q = qkv[:, :d_head]
    k = qkv[:, d_head:2 * d_head]
    v = qkv[:, 2 * d_head:]

    # Reference scales scores by 1 / K.size(-1)**2 (== 1/d_head^2); kept as-is.
    scale = 1.0 / float(d_head * d_head)
    s = jax.lax.dot_general(q.astype(jnp.bfloat16), k.astype(jnp.bfloat16),
                            (((1,), (1,)), ((), ())),
                            preferred_element_type=jnp.float32) * scale     # (S, S)

    # Mask built in-kernel from iotas + the (1, S) key-padding row.
    rows = jax.lax.broadcasted_iota(jnp.int32, (S, S), 0)
    cols = jax.lax.broadcasted_iota(jnp.int32, (S, S), 1)
    # TODO(synk): strict causal (j > i); reference torch.triu also masks the diagonal.
    masked = jnp.logical_or(cols > rows, pad_ref[0] > 0.5)
    s = jnp.where(masked, -1e30, s)

    s = s - jnp.max(s, axis=-1, keepdims=True)
    p = jnp.exp(s)
    p = p * pl.reciprocal(jnp.sum(p, axis=-1, keepdims=True), approx=True)

    ctx = jnp.dot(p.astype(jnp.bfloat16), v.astype(jnp.bfloat16),
                  preferred_element_type=jnp.float32)                # (S, d_head)
    out_ref[0, 0] = ctx.astype(out_ref.dtype)


def proj_add_ln_kernel(ctx_ref, x_ref, wo_ref, bo_ref, out_ref):
    # Output projection + residual add + LayerNorm fused (one batch element per step).
    attn = jnp.dot(ctx_ref[0], wo_ref[...],
                   preferred_element_type=jnp.float32) + bo_ref[...]
    z = x_ref[0].astype(jnp.float32) + attn
    # TODO(synk): reference builds nn.LayerNorm(new_result.size()) (full-tensor norm,
    # fresh params each call); standard per-token last-dim LayerNorm used here.
    mean = jnp.mean(z, axis=-1, keepdims=True)
    var = jnp.mean((z - mean) ** 2, axis=-1, keepdims=True)
    out_ref[0] = ((z - mean) * jax.lax.rsqrt(var + 1e-5)).astype(out_ref.dtype)


def ffn_add_ln_kernel(x_ref, w1_ref, b1_ref, w2_ref, b2_ref, out_ref, acc_ref):
    # grid = (B, n_hidden_tiles): the 4*D hidden dim is streamed, fp32 accumulation.
    n = pl.program_id(1)

    @pl.when(n == 0)
    def _():
        acc_ref[...] = jnp.zeros_like(acc_ref)

    x = x_ref[0]                                                     # (S, D) bf16
    h = jnp.dot(x, w1_ref[...], preferred_element_type=jnp.float32) + b1_ref[...]
    # TODO(synk): nn.GELU() default is the exact erf form; tanh approximation used here.
    h = jax.nn.gelu(h, approximate=True)
    acc_ref[...] += jnp.dot(h.astype(jnp.bfloat16), w2_ref[...],
                            preferred_element_type=jnp.float32)

    @pl.when(n == pl.num_programs(1) - 1)
    def _():
        z = x_ref[0].astype(jnp.float32) + acc_ref[...] + b2_ref[...]
        mean = jnp.mean(z, axis=-1, keepdims=True)
        var = jnp.mean((z - mean) ** 2, axis=-1, keepdims=True)
        out_ref[0] = ((z - mean) * jax.lax.rsqrt(var + 1e-5)).astype(out_ref.dtype)


def logits_kernel(x_ref, emb_ref, b_ref, out_ref):
    # Tied-weight output projection, tiled over the vocab axis; dot_general
    # contracting the last dims of both operands == x @ E^T with no transpose copy.
    logits = jax.lax.dot_general(x_ref[0], emb_ref[...],
                                 (((1,), (1,)), ((), ())),
                                 preferred_element_type=jnp.float32) + b_ref[...]
    out_ref[0] = logits.astype(out_ref.dtype)


# ----------------------------------------------------------------------------
# Wrappers (pallas_call plumbing)
# ----------------------------------------------------------------------------
def _full_spec(shape):
    return pl.BlockSpec(shape, lambda *_: tuple(0 for _ in shape))


def embed(tokens, emb_table, pos_table):
    B, S = tokens.shape
    V, D = emb_table.shape
    emb3 = emb_table.reshape(V, 1, D)
    pos3 = pos_table.reshape(S, 1, D)
    out = pl.pallas_call(
        functools.partial(embed_kernel, inv_sqrt_d=1.0 / float(D) ** 0.5),
        out_shape=jax.ShapeDtypeStruct((B, S, 1, D), jnp.bfloat16),
        grid_spec=pltpu.PrefetchScalarGridSpec(
            num_scalar_prefetch=1,
            grid=(B, S),
            in_specs=[
                pl.BlockSpec((1, 1, D), lambda b, s, tok: (tok[b, s], 0, 0)),
                pl.BlockSpec((1, 1, D), lambda b, s, tok: (s, 0, 0)),
            ],
            out_specs=pl.BlockSpec((1, 1, 1, D), lambda b, s, tok: (b, s, 0, 0)),
        ),
        compiler_params=pltpu.CompilerParams(
            dimension_semantics=("parallel", "arbitrary")),
    )(tokens, emb3, pos3)
    return out.reshape(B, S, D)


def mha_core(x, pad, wqkv_h, bqkv_h, n_head):
    B, S, D = x.shape
    dh = D // n_head
    return pl.pallas_call(
        functools.partial(mha_core_kernel, d_head=dh),
        out_shape=jax.ShapeDtypeStruct((B, n_head, S, dh), jnp.bfloat16),
        grid=(B, n_head),
        in_specs=[
            pl.BlockSpec((1, S, D), lambda b, h: (b, 0, 0)),
            pl.BlockSpec((1, 1, S), lambda b, h: (b, 0, 0)),
            pl.BlockSpec((1, D, 3 * dh), lambda b, h: (h, 0, 0)),
            pl.BlockSpec((1, 1, 3 * dh), lambda b, h: (h, 0, 0)),
        ],
        out_specs=pl.BlockSpec((1, 1, S, dh), lambda b, h: (b, h, 0, 0)),
        compiler_params=pltpu.CompilerParams(
            dimension_semantics=("parallel", "parallel")),
    )(x, pad, wqkv_h, bqkv_h)


def proj_add_ln(ctx, x, wo, bo):
    B, S, D = x.shape
    bspec = pl.BlockSpec((1, S, D), lambda b: (b, 0, 0))
    return pl.pallas_call(
        proj_add_ln_kernel,
        out_shape=jax.ShapeDtypeStruct((B, S, D), jnp.bfloat16),
        grid=(B,),
        in_specs=[bspec, bspec, _full_spec(wo.shape), _full_spec(bo.shape)],
        out_specs=bspec,
        compiler_params=pltpu.CompilerParams(dimension_semantics=("parallel",)),
    )(ctx, x, wo, bo)


def ffn_add_ln(x, w1, b1, w2, b2, *, hidden_tile=512):
    B, S, D = x.shape
    Dh = w1.shape[1]
    tn = min(hidden_tile, Dh)                    # capped for v7x's 64 MiB VMEM
    assert Dh % tn == 0, "hidden dim must be divisible by the hidden tile"
    xspec = pl.BlockSpec((1, S, D), lambda b, n: (b, 0, 0))
    return pl.pallas_call(
        ffn_add_ln_kernel,
        out_shape=jax.ShapeDtypeStruct((B, S, D), jnp.bfloat16),
        grid=(B, Dh // tn),
        in_specs=[
            xspec,
            pl.BlockSpec((D, tn), lambda b, n: (0, n)),
            pl.BlockSpec((1, tn), lambda b, n: (0, n)),
            pl.BlockSpec((tn, D), lambda b, n: (n, 0)),
            pl.BlockSpec((1, D), lambda b, n: (0, 0)),
        ],
        out_specs=xspec,
        scratch_shapes=[pltpu.VMEM((S, D), jnp.float32)],
        compiler_params=pltpu.CompilerParams(
            dimension_semantics=("parallel", "arbitrary")),
    )(x, w1, b1, w2, b2)


def logits_fn(x, emb_table, b_lin, *, vocab_tile=1024):
    B, S1, D = x.shape
    V = emb_table.shape[0]
    tv = min(vocab_tile, V)                      # capped for v7x's 64 MiB VMEM
    assert V % tv == 0, "vocab must be divisible by the vocab tile"
    return pl.pallas_call(
        logits_kernel,
        out_shape=jax.ShapeDtypeStruct((B, S1, V), jnp.float32),
        grid=(B, V // tv),
        in_specs=[
            pl.BlockSpec((1, S1, D), lambda b, v: (b, 0, 0)),
            pl.BlockSpec((tv, D), lambda b, v: (v, 0)),
            pl.BlockSpec((1, tv), lambda b, v: (0, v)),
        ],
        out_specs=pl.BlockSpec((1, S1, tv), lambda b, v: (b, 0, v)),
        compiler_params=pltpu.CompilerParams(
            dimension_semantics=("parallel", "parallel")),
    )(x, emb_table, b_lin)


# ----------------------------------------------------------------------------
# Glue: params, positional table, full forward
# ----------------------------------------------------------------------------
def sinusoid_table(S, D):
    pos = np.arange(S, dtype=np.float64)[:, None]
    i = np.arange(D, dtype=np.float64)[None, :]
    angle = pos / np.power(10000.0, 2.0 * (i // 2) / float(D))
    table = np.zeros((S, D), dtype=np.float32)
    table[:, 0::2] = np.sin(angle[:, 0::2])
    table[:, 1::2] = np.cos(angle[:, 1::2])
    return jnp.asarray(table)


def init_params(key, vocab_size, n_layer, d_model, seq_len, n_head):
    dh = d_model // n_head
    ks = jax.random.split(key, 2 + n_layer)
    params = {
        "emb": (0.02 * jax.random.normal(ks[0], (vocab_size, d_model))).astype(jnp.bfloat16),
        "b_lin": 0.02 * jax.random.normal(ks[1], (1, vocab_size), jnp.float32),
        "pos": sinusoid_table(seq_len, d_model),
        "layers": [],
    }
    for l in range(n_layer):
        lk = jax.random.split(ks[2 + l], 6)
        wq = 0.02 * jax.random.normal(lk[0], (d_model, d_model), jnp.float32)
        wk = 0.02 * jax.random.normal(lk[1], (d_model, d_model), jnp.float32)
        wv = 0.02 * jax.random.normal(lk[2], (d_model, d_model), jnp.float32)
        # Fused per-head Q/K/V weight: (n_head, d_model, 3*d_head).
        wqkv = jnp.concatenate([wq.reshape(d_model, n_head, dh),
                                wk.reshape(d_model, n_head, dh),
                                wv.reshape(d_model, n_head, dh)], axis=-1)
        wqkv = jnp.transpose(wqkv, (1, 0, 2)).astype(jnp.bfloat16)
        lp = {
            "wqkv_h": wqkv,
            "bqkv_h": jnp.zeros((n_head, 1, 3 * dh), jnp.float32),
            "wo": (0.02 * jax.random.normal(lk[3], (d_model, d_model))).astype(jnp.bfloat16),
            "bo": jnp.zeros((1, d_model), jnp.float32),
            "w1": (0.02 * jax.random.normal(lk[4], (d_model, 4 * d_model))).astype(jnp.bfloat16),
            "b1": jnp.zeros((1, 4 * d_model), jnp.float32),
            "w2": (0.02 * jax.random.normal(lk[5], (4 * d_model, d_model))).astype(jnp.bfloat16),
            "b2": jnp.zeros((1, d_model), jnp.float32),
        }
        params["layers"].append(lp)
    return params


def gpt_pretrain_forward(tokens, params, n_head):
    B, S = tokens.shape
    x = embed(tokens, params["emb"], params["pos"])                  # embedding gather + pos enc
    pad = (tokens == 0).astype(jnp.float32)[:, None, :]              # (B, 1, S) key-padding mask
    for lp in params["layers"]:                                      # transformer_block loop
        D = x.shape[-1]
        ctx = mha_core(x, pad, lp["wqkv_h"], lp["bqkv_h"], n_head)   # (B, H, S, dh)
        ctx = ctx.transpose(0, 2, 1, 3).reshape(B, S, D)             # concat heads (XLA glue)
        x = proj_add_ln(ctx, x, lp["wo"], lp["bo"])                  # Wo + add & norm (fused)
        x = ffn_add_ln(x, lp["w1"], lp["b1"], lp["w2"], lp["b2"])    # FFN + add & norm (fused)
        # TODO(synk): nn.Dropout(0.1) omitted (inference no-op).
    x = x[:, :-1, :]                                                 # drop last token BEFORE logits
    return logits_fn(x, params["emb"], params["b_lin"])              # tied-weight linear


# ----------------------------------------------------------------------------
if __name__ == "__main__":
    B, S = 2, 8
    D, H = 32, 4
    V = 64
    N_LAYER = 2

    key = jax.random.PRNGKey(0)
    k_tok, k_par = jax.random.split(key)
    tokens = jax.random.randint(k_tok, (B, S), 1, V, dtype=jnp.int32)
    params = init_params(k_par, V, N_LAYER, D, S, H)

    fwd = jax.jit(functools.partial(gpt_pretrain_forward, n_head=H))
    out = jax.block_until_ready(fwd(tokens, params))
    assert out.shape == (B, S - 1, V), out.shape
    assert bool(jnp.all(jnp.isfinite(out)))
    print("KERNEL_OK")
</pallas_src>

<mosaic_0001>
module attributes {stable_mosaic.version = 11 : i64} {
  func.func @embed_kernel(%arg0: i32, %arg1: i32, %arg2: memref<2x8xi32, #tpu.memory_space<smem>>, %arg3: memref<1x1x32xbf16, #tpu.memory_space<vmem>>, %arg4: memref<1x1x32xf32, #tpu.memory_space<vmem>>, %arg5: memref<1x1x1x32xbf16, #tpu.memory_space<vmem>>) attributes {dimension_semantics = [#tpu.dimension_semantics<parallel>, #tpu.dimension_semantics<arbitrary>], iteration_bounds = array<i64: 2, 8>, scalar_prefetch = 1 : i64, scratch_operands = 0 : i64, tpu.core_type = #tpu.core_type<tc>, window_params = [{transform_indices = @transform_0, window_bounds = array<i64: 1, 1, 32>}, {transform_indices = @transform_1, window_bounds = array<i64: 1, 1, 32>}, {transform_indices = @transform_2, window_bounds = array<i64: 1, 1, 1, 32>}]} {
    %c0 = arith.constant 0 : index
    %c0_0 = arith.constant 0 : index
    %c0_1 = arith.constant 0 : index
    %0 = vector.load %arg3[%c0, %c0_0, %c0_1] : memref<1x1x32xbf16, #tpu.memory_space<vmem>>, vector<1x1x32xbf16>
    %1 = arith.extf %0 : vector<1x1x32xbf16> to vector<1x1x32xf32>
    %cst = arith.constant 0.176776692 : f32
    %2 = vector.broadcast %cst : f32 to vector<1x1x32xf32>
    %3 = arith.mulf %1, %2 : vector<1x1x32xf32>
    %c0_2 = arith.constant 0 : index
    %c0_3 = arith.constant 0 : index
    %c0_4 = arith.constant 0 : index
    %4 = vector.load %arg4[%c0_2, %c0_3, %c0_4] : memref<1x1x32xf32, #tpu.memory_space<vmem>>, vector<1x1x32xf32>
    %5 = arith.addf %3, %4 : vector<1x1x32xf32>
    %6 = arith.truncf %5 : vector<1x1x32xf32> to vector<1x1x32xbf16>
    %c0_5 = arith.constant 0 : index
    %c0_6 = arith.constant 0 : index
    %c0_7 = arith.constant 0 : index
    %c0_8 = arith.constant 0 : index
    %7 = vector.load %arg5[%c0_5, %c0_6, %c0_7, %c0_8] : memref<1x1x1x32xbf16, #tpu.memory_space<vmem>>, vector<1x1x1x32xbf16>
    %8 = vector.shape_cast %7 : vector<1x1x1x32xbf16> to vector<1x1x32xbf16>
    %9 = vector.shape_cast %6 : vector<1x1x32xbf16> to vector<1x1x1x32xbf16>
    tpu.vector_store %arg5[%c0_5, %c0_6, %c0_7, %c0_8], %9 {strides = array<i32>} : memref<1x1x1x32xbf16, #tpu.memory_space<vmem>>, vector<1x1x1x32xbf16>,
    return
  }
  func.func @transform_0(%arg0: i32, %arg1: i32, %arg2: memref<2x8xi32, #tpu.memory_space<smem>>) -> (i32, i32, i32) {
    %0 = arith.index_cast %arg0 : i32 to index
    %1 = arith.index_cast %arg1 : i32 to index
    %2 = memref.load %arg2[%0, %1] : memref<2x8xi32, #tpu.memory_space<smem>>
    %c0_i32 = arith.constant 0 : i32
    %c0_i32_0 = arith.constant 0 : i32
    %c0_i32_1 = arith.constant 0 : i32
    return %2, %c0_i32, %c0_i32_0 : i32, i32, i32
  }
  func.func @transform_1(%arg0: i32, %arg1: i32, %arg2: memref<2x8xi32, #tpu.memory_space<smem>>) -> (i32, i32, i32) {
    %c0_i32 = arith.constant 0 : i32
    %c0_i32_0 = arith.constant 0 : i32
    %c0_i32_1 = arith.constant 0 : i32
    return %arg1, %c0_i32, %c0_i32_0 : i32, i32, i32
  }
  func.func @transform_2(%arg0: i32, %arg1: i32, %arg2: memref<2x8xi32, #tpu.memory_space<smem>>) -> (i32, i32, i32, i32) {
    %c0_i32 = arith.constant 0 : i32
    %c0_i32_0 = arith.constant 0 : i32
    %c0_i32_1 = arith.constant 0 : i32
    return %arg0, %arg1, %c0_i32, %c0_i32_0 : i32, i32, i32, i32
  }
}

module attributes {stable_mosaic.version = 11 : i64} {
  func.func @mha_core_kernel(%arg0: i32, %arg1: i32, %arg2: memref<1x8x32xbf16, #tpu.memory_space<vmem>>, %arg3: memref<1x1x8xf32, #tpu.memory_space<vmem>>, %arg4: memref<1x32x24xbf16, #tpu.memory_space<vmem>>, %arg5: memref<1x1x24xf32, #tpu.memory_space<vmem>>, %arg6: memref<1x1x8x8xbf16, #tpu.memory_space<vmem>>) attributes {dimension_semantics = [#tpu.dimension_semantics<parallel>, #tpu.dimension_semantics<parallel>], iteration_bounds = array<i64: 2, 4>, scalar_prefetch = 0 : i64, scratch_operands = 0 : i64, tpu.core_type = #tpu.core_type<tc>, window_params = [{transform_indices = @transform_0, window_bounds = array<i64: 1, 8, 32>}, {transform_indices = @transform_1, window_bounds = array<i64: 1, 1, 8>}, {transform_indices = @transform_2, window_bounds = array<i64: 1, 32, 24>}, {transform_indices = @transform_3, window_bounds = array<i64: 1, 1, 24>}, {transform_indices = @transform_4, window_bounds = array<i64: 1, 1, 8, 8>}]} {
    %c0 = arith.constant 0 : index
    %c0_0 = arith.constant 0 : index
    %c0_1 = arith.constant 0 : index
    %0 = vector.load %arg2[%c0, %c0_0, %c0_1] : memref<1x8x32xbf16, #tpu.memory_space<vmem>>, vector<1x8x32xbf16>
    %1 = vector.shape_cast %0 : vector<1x8x32xbf16> to vector<8x32xbf16>
    %c0_2 = arith.constant 0 : index
    %c0_3 = arith.constant 0 : index
    %c0_4 = arith.constant 0 : index
    %2 = vector.load %arg4[%c0_2, %c0_3, %c0_4] : memref<1x32x24xbf16, #tpu.memory_space<vmem>>, vector<1x32x24xbf16>
    %3 = vector.shape_cast %2 : vector<1x32x24xbf16> to vector<32x24xbf16>
    %cst = arith.constant dense<0.000000e+00> : vector<8x24xf32>
    %4 = tpu.matmul %1, %3, %cst {dimension_numbers = #tpu.dot_dimension_numbers<[1], [0], [0], [1], [0, 0, 1, 1], [], []>} : vector<8x32xbf16>, vector<32x24xbf16>, vector<8x24xf32> -> vector<8x24xf32>
    %c0_5 = arith.constant 0 : index
    %c0_6 = arith.constant 0 : index
    %c0_7 = arith.constant 0 : index
    %5 = vector.load %arg5[%c0_5, %c0_6, %c0_7] : memref<1x1x24xf32, #tpu.memory_space<vmem>>, vector<1x1x24xf32>
    %6 = vector.shape_cast %5 : vector<1x1x24xf32> to vector<1x24xf32>
    %7 = vector.broadcast %6 : vector<1x24xf32> to vector<8x24xf32>
    %8 = arith.addf %4, %7 : vector<8x24xf32>
    %9 = vector.extract_strided_slice %8 {offsets = [0, 0], sizes = [8, 8], strides = [1, 1]} : vector<8x24xf32> to vector<8x8xf32>
    %10 = vector.extract_strided_slice %8 {offsets = [0, 8], sizes = [8, 8], strides = [1, 1]} : vector<8x24xf32> to vector<8x8xf32>
    %11 = vector.extract_strided_slice %8 {offsets = [0, 16], sizes = [8, 8], strides = [1, 1]} : vector<8x24xf32> to vector<8x8xf32>
    %12 = arith.truncf %9 : vector<8x8xf32> to vector<8x8xbf16>
    %13 = arith.truncf %10 : vector<8x8xf32> to vector<8x8xbf16>
    %cst_8 = arith.constant dense<0.000000e+00> : vector<8x8xf32>
    %14 = tpu.matmul %12, %13, %cst_8 {dimension_numbers = #tpu.dot_dimension_numbers<[1], [1], [0], [0], [0, 0, 1, 0], [], []>} : vector<8x8xbf16>, vector<8x8xbf16>, vector<8x8xf32> -> vector<8x8xf32>
    %cst_9 = arith.constant 1.562500e-02 : f32
    %15 = vector.broadcast %cst_9 : f32 to vector<8x8xf32>
    %16 = arith.mulf %14, %15 : vector<8x8xf32>
    %17 = tpu.iota {dimensions = array<i32: 0>} : vector<8x8xi32>
    %18 = tpu.iota {dimensions = array<i32: 1>} : vector<8x8xi32>
    %19 = arith.cmpi sgt, %18, %17 : vector<8x8xi32>
    %c0_10 = arith.constant 0 : index
    %c0_11 = arith.constant 0 : index
    %c0_12 = arith.constant 0 : index
    %20 = vector.load %arg3[%c0_10, %c0_11, %c0_12] : memref<1x1x8xf32, #tpu.memory_space<vmem>>, vector<1x1x8xf32>
    %21 = vector.shape_cast %20 : vector<1x1x8xf32> to vector<1x8xf32>
    %cst_13 = arith.constant 5.000000e-01 : f32
    %22 = vector.broadcast %cst_13 : f32 to vector<1x8xf32>
    %23 = arith.cmpf ogt, %21, %22 : vector<1x8xf32>
    %24 = vector.broadcast %23 : vector<1x8xi1> to vector<8x8xi1>
    %25 = arith.ori %19, %24 : vector<8x8xi1>
    %cst_14 = arith.constant -1.000000e+30 : f32
    %26 = vector.broadcast %cst_14 : f32 to vector<8x8xf32>
    %27 = arith.select %25, %26, %16 : vector<8x8xi1>, vector<8x8xf32>
    %cst_15 = arith.constant dense<0xFF800000> : vector<8xf32>
    %28 = vector.multi_reduction <maximumf>, %27, %cst_15 [1] : vector<8x8xf32> to vector<8xf32>
    %29 = vector.shape_cast %28 : vector<8xf32> to vector<8x1xf32>
    %30 = vector.broadcast %29 : vector<8x1xf32> to vector<8x8xf32>
    %31 = arith.subf %27, %30 : vector<8x8xf32>
    %32 = math.exp %31 : vector<8x8xf32>
    %cst_16 = arith.constant dense<0.000000e+00> : vector<8xf32>
    %33 = vector.multi_reduction <add>, %32, %cst_16 [1] : vector<8x8xf32> to vector<8xf32>
    %34 = vector.shape_cast %33 : vector<8xf32> to vector<8x1xf32>
    %35 = tpu.reciprocal %34 {approx = true} : vector<8x1xf32> -> vector<8x1xf32>
    %36 = vector.broadcast %35 : vector<8x1xf32> to vector<8x8xf32>
    %37 = arith.mulf %32, %36 : vector<8x8xf32>
    %38 = arith.truncf %37 : vector<8x8xf32> to vector<8x8xbf16>
    %39 = arith.truncf %11 : vector<8x8xf32> to vector<8x8xbf16>
    %cst_17 = arith.constant dense<0.000000e+00> : vector<8x8xf32>
    %40 = tpu.matmul %38, %39, %cst_17 {dimension_numbers = #tpu.dot_dimension_numbers<[1], [0], [0], [1], [0, 0, 1, 1], [], []>} : vector<8x8xbf16>, vector<8x8xbf16>, vector<8x8xf32> -> vector<8x8xf32>
    %41 = arith.truncf %40 : vector<8x8xf32> to vector<8x8xbf16>
    %c0_18 = arith.constant 0 : index
    %c0_19 = arith.constant 0 : index
    %c0_20 = arith.constant 0 : index
    %c0_21 = arith.constant 0 : index
    %42 = vector.load %arg6[%c0_18, %c0_19, %c0_20, %c0_21] : memref<1x1x8x8xbf16, #tpu.memory_space<vmem>>, vector<1x1x8x8xbf16>
    %43 = vector.shape_cast %42 : vector<1x1x8x8xbf16> to vector<8x8xbf16>
    %44 = vector.shape_cast %41 : vector<8x8xbf16> to vector<1x1x8x8xbf16>
    tpu.vector_store %arg6[%c0_18, %c0_19, %c0_20, %c0_21], %44 {strides = array<i32>} : memref<1x1x8x8xbf16, #tpu.memory_space<vmem>>, vector<1x1x8x8xbf16>,
    return
  }
  func.func @transform_0(%arg0: i32, %arg1: i32) -> (i32, i32, i32) {
    %c0_i32 = arith.constant 0 : i32
    %c0_i32_0 = arith.constant 0 : i32
    %c0_i32_1 = arith.constant 0 : i32
    return %arg0, %c0_i32, %c0_i32_0 : i32, i32, i32
  }
  func.func @transform_1(%arg0: i32, %arg1: i32) -> (i32, i32, i32) {
    %c0_i32 = arith.constant 0 : i32
    %c0_i32_0 = arith.constant 0 : i32
    %c0_i32_1 = arith.constant 0 : i32
    return %arg0, %c0_i32, %c0_i32_0 : i32, i32, i32
  }
  func.func @transform_2(%arg0: i32, %arg1: i32) -> (i32, i32, i32) {
    %c0_i32 = arith.constant 0 : i32
    %c0_i32_0 = arith.constant 0 : i32
    %c0_i32_1 = arith.constant 0 : i32
    return %arg1, %c0_i32, %c0_i32_0 : i32, i32, i32
  }
  func.func @transform_3(%arg0: i32, %arg1: i32) -> (i32, i32, i32) {
    %c0_i32 = arith.constant 0 : i32
    %c0_i32_0 = arith.constant 0 : i32
    %c0_i32_1 = arith.constant 0 : i32
    return %arg1, %c0_i32, %c0_i32_0 : i32, i32, i32
  }
  func.func @transform_4(%arg0: i32, %arg1: i32) -> (i32, i32, i32, i32) {
    %c0_i32 = arith.constant 0 : i32
    %c0_i32_0 = arith.constant 0 : i32
    %c0_i32_1 = arith.constant 0 : i32
    return %arg0, %arg1, %c0_i32, %c0_i32_0 : i32, i32, i32, i32
  }
}

module attributes {stable_mosaic.version = 11 : i64} {
  func.func @proj_add_ln_kernel(%arg0: i32, %arg1: memref<1x8x32xbf16, #tpu.memory_space<vmem>>, %arg2: memref<1x8x32xbf16, #tpu.memory_space<vmem>>, %arg3: memref<32x32xbf16, #tpu.memory_space<vmem>>, %arg4: memref<1x32xf32, #tpu.memory_space<vmem>>, %arg5: memref<1x8x32xbf16, #tpu.memory_space<vmem>>) attributes {dimension_semantics = [#tpu.dimension_semantics<parallel>], iteration_bounds = array<i64: 2>, scalar_prefetch = 0 : i64, scratch_operands = 0 : i64, tpu.core_type = #tpu.core_type<tc>, window_params = [{transform_indices = @transform_0, window_bounds = array<i64: 1, 8, 32>}, {transform_indices = @transform_1, window_bounds = array<i64: 1, 8, 32>}, {pipeline_mode = #tpu.pipeline_mode<synchronous>, transform_indices = @transform_2, window_bounds = array<i64: 32, 32>}, {pipeline_mode = #tpu.pipeline_mode<synchronous>, transform_indices = @transform_3, window_bounds = array<i64: 1, 32>}, {transform_indices = @transform_4, window_bounds = array<i64: 1, 8, 32>}]} {
    %c0 = arith.constant 0 : index
    %c0_0 = arith.constant 0 : index
    %c0_1 = arith.constant 0 : index
    %0 = vector.load %arg1[%c0, %c0_0, %c0_1] : memref<1x8x32xbf16, #tpu.memory_space<vmem>>, vector<1x8x32xbf16>
    %1 = vector.shape_cast %0 : vector<1x8x32xbf16> to vector<8x32xbf16>
    %c0_2 = arith.constant 0 : index
    %c0_3 = arith.constant 0 : index
    %2 = vector.load %arg3[%c0_2, %c0_3] : memref<32x32xbf16, #tpu.memory_space<vmem>>, vector<32x32xbf16>
    %cst = arith.constant dense<0.000000e+00> : vector<8x32xf32>
    %3 = tpu.matmul %1, %2, %cst {dimension_numbers = #tpu.dot_dimension_numbers<[1], [0], [0], [1], [0, 0, 1, 1], [], []>} : vector<8x32xbf16>, vector<32x32xbf16>, vector<8x32xf32> -> vector<8x32xf32>
    %c0_4 = arith.constant 0 : index
    %c0_5 = arith.constant 0 : index
    %4 = vector.load %arg4[%c0_4, %c0_5] : memref<1x32xf32, #tpu.memory_space<vmem>>, vector<1x32xf32>
    %5 = vector.broadcast %4 : vector<1x32xf32> to vector<8x32xf32>
    %6 = arith.addf %3, %5 : vector<8x32xf32>
    %c0_6 = arith.constant 0 : index
    %c0_7 = arith.constant 0 : index
    %c0_8 = arith.constant 0 : index
    %7 = vector.load %arg2[%c0_6, %c0_7, %c0_8] : memref<1x8x32xbf16, #tpu.memory_space<vmem>>, vector<1x8x32xbf16>
    %8 = vector.shape_cast %7 : vector<1x8x32xbf16> to vector<8x32xbf16>
    %9 = arith.extf %8 : vector<8x32xbf16> to vector<8x32xf32>
    %10 = arith.addf %9, %6 : vector<8x32xf32>
    %cst_9 = arith.constant dense<0.000000e+00> : vector<8xf32>
    %11 = vector.multi_reduction <add>, %10, %cst_9 [1] : vector<8x32xf32> to vector<8xf32>
    %12 = vector.shape_cast %11 : vector<8xf32> to vector<8x1xf32>
    %cst_10 = arith.constant 3.200000e+01 : f32
    %13 = vector.broadcast %cst_10 : f32 to vector<8x1xf32>
    %14 = arith.divf %12, %13 : vector<8x1xf32>
    %15 = vector.broadcast %14 : vector<8x1xf32> to vector<8x32xf32>
    %16 = arith.subf %10, %15 : vector<8x32xf32>
    %17 = arith.mulf %16, %16 : vector<8x32xf32>
    %cst_11 = arith.constant dense<0.000000e+00> : vector<8xf32>
    %18 = vector.multi_reduction <add>, %17, %cst_11 [1] : vector<8x32xf32> to vector<8xf32>
    %19 = vector.shape_cast %18 : vector<8xf32> to vector<8x1xf32>
    %cst_12 = arith.constant 3.200000e+01 : f32
    %20 = vector.broadcast %cst_12 : f32 to vector<8x1xf32>
    %21 = arith.divf %19, %20 : vector<8x1xf32>
    %22 = vector.broadcast %14 : vector<8x1xf32> to vector<8x32xf32>
    %23 = arith.subf %10, %22 : vector<8x32xf32>
    %cst_13 = arith.constant 9.99999974E-6 : f32
    %24 = vector.broadcast %cst_13 : f32 to vector<8x1xf32>
    %25 = arith.addf %21, %24 : vector<8x1xf32>
    %26 = math.rsqrt %25 : vector<8x1xf32>
    %27 = vector.broadcast %26 : vector<8x1xf32> to vector<8x32xf32>
    %28 = arith.mulf %23, %27 : vector<8x32xf32>
    %29 = arith.truncf %28 : vector<8x32xf32> to vector<8x32xbf16>
    %c0_14 = arith.constant 0 : index
    %c0_15 = arith.constant 0 : index
    %c0_16 = arith.constant 0 : index
    %30 = vector.load %arg5[%c0_14, %c0_15, %c0_16] : memref<1x8x32xbf16, #tpu.memory_space<vmem>>, vector<1x8x32xbf16>
    %31 = vector.shape_cast %30 : vector<1x8x32xbf16> to vector<8x32xbf16>
    %32 = vector.shape_cast %29 : vector<8x32xbf16> to vector<1x8x32xbf16>
    tpu.vector_store %arg5[%c0_14, %c0_15, %c0_16], %32 {strides = array<i32>} : memref<1x8x32xbf16, #tpu.memory_space<vmem>>, vector<1x8x32xbf16>,
    return
  }
  func.func @transform_0(%arg0: i32) -> (i32, i32, i32) {
    %c0_i32 = arith.constant 0 : i32
    %c0_i32_0 = arith.constant 0 : i32
    %c0_i32_1 = arith.constant 0 : i32
    return %arg0, %c0_i32, %c0_i32_0 : i32, i32, i32
  }
  func.func @transform_1(%arg0: i32) -> (i32, i32, i32) {
    %c0_i32 = arith.constant 0 : i32
    %c0_i32_0 = arith.constant 0 : i32
    %c0_i32_1 = arith.constant 0 : i32
    return %arg0, %c0_i32, %c0_i32_0 : i32, i32, i32
  }
  func.func @transform_2(%arg0: i32) -> (i32, i32) {
    %c0_i32 = arith.constant 0 : i32
    %c0_i32_0 = arith.constant 0 : i32
    %c0_i32_1 = arith.constant 0 : i32
    return %c0_i32, %c0_i32_0 : i32, i32
  }
  func.func @transform_3(%arg0: i32) -> (i32, i32) {
    %c0_i32 = arith.constant 0 : i32
    %c0_i32_0 = arith.constant 0 : i32
    %c0_i32_1 = arith.constant 0 : i32
    return %c0_i32, %c0_i32_0 : i32, i32
  }
  func.func @transform_4(%arg0: i32) -> (i32, i32, i32) {
    %c0_i32 = arith.constant 0 : i32
    %c0_i32_0 = arith.constant 0 : i32
    %c0_i32_1 = arith.constant 0 : i32
    return %arg0, %c0_i32, %c0_i32_0 : i32, i32, i32
  }
}

module attributes {stable_mosaic.version = 11 : i64} {
  func.func @ffn_add_ln_kernel(%arg0: i32, %arg1: i32, %arg2: memref<1x8x32xbf16, #tpu.memory_space<vmem>>, %arg3: memref<32x128xbf16, #tpu.memory_space<vmem>>, %arg4: memref<1x128xf32, #tpu.memory_space<vmem>>, %arg5: memref<128x32xbf16, #tpu.memory_space<vmem>>, %arg6: memref<1x32xf32, #tpu.memory_space<vmem>>, %arg7: memref<1x8x32xbf16, #tpu.memory_space<vmem>>, %arg8: memref<8x32xf32, #tpu.memory_space<vmem>>) attributes {dimension_semantics = [#tpu.dimension_semantics<parallel>, #tpu.dimension_semantics<arbitrary>], iteration_bounds = array<i64: 2, 1>, scalar_prefetch = 0 : i64, scratch_operands = 1 : i64, tpu.core_type = #tpu.core_type<tc>, window_params = [{transform_indices = @transform_0, window_bounds = array<i64: 1, 8, 32>}, {transform_indices = @transform_1, window_bounds = array<i64: 32, 128>}, {transform_indices = @transform_2, window_bounds = array<i64: 1, 128>}, {transform_indices = @transform_3, window_bounds = array<i64: 128, 32>}, {pipeline_mode = #tpu.pipeline_mode<synchronous>, transform_indices = @transform_4, window_bounds = array<i64: 1, 32>}, {transform_indices = @transform_5, window_bounds = array<i64: 1, 8, 32>}]} {
    %c0_i32 = arith.constant 0 : i32
    %0 = arith.cmpi eq, %arg1, %c0_i32 : i32
    %1 = arith.extui %0 : i1 to i32
    %c0_i32_0 = arith.constant 0 : i32
    %2 = arith.cmpi ne, %1, %c0_i32_0 : i32
    scf.if %2 {
      %cst_20 = arith.constant 0.000000e+00 : f32
      %32 = vector.broadcast %cst_20 : f32 to vector<8x32xf32>
      %c0_21 = arith.constant 0 : index
      %c0_22 = arith.constant 0 : index
      %33 = vector.load %arg8[%c0_21, %c0_22] : memref<8x32xf32, #tpu.memory_space<vmem>>, vector<8x32xf32>
      tpu.vector_store %arg8[%c0_21, %c0_22], %32 {strides = array<i32>} : memref<8x32xf32, #tpu.memory_space<vmem>>, vector<8x32xf32>,
    } else {
    }
    %c0 = arith.constant 0 : index
    %c0_1 = arith.constant 0 : index
    %c0_2 = arith.constant 0 : index
    %3 = vector.load %arg2[%c0, %c0_1, %c0_2] : memref<1x8x32xbf16, #tpu.memory_space<vmem>>, vector<1x8x32xbf16>
    %4 = vector.shape_cast %3 : vector<1x8x32xbf16> to vector<8x32xbf16>
    %c0_3 = arith.constant 0 : index
    %c0_4 = arith.constant 0 : index
    %5 = vector.load %arg3[%c0_3, %c0_4] : memref<32x128xbf16, #tpu.memory_space<vmem>>, vector<32x128xbf16>
    %cst = arith.constant dense<0.000000e+00> : vector<8x128xf32>
    %6 = tpu.matmul %4, %5, %cst {dimension_numbers = #tpu.dot_dimension_numbers<[1], [0], [0], [1], [0, 0, 1, 1], [], []>} : vector<8x32xbf16>, vector<32x128xbf16>, vector<8x128xf32> -> vector<8x128xf32>
    %c0_5 = arith.constant 0 : index
    %c0_6 = arith.constant 0 : index
    %7 = vector.load %arg4[%c0_5, %c0_6] : memref<1x128xf32, #tpu.memory_space<vmem>>, vector<1x128xf32>
    %8 = vector.broadcast %7 : vector<1x128xf32> to vector<8x128xf32>
    %9 = arith.addf %6, %8 : vector<8x128xf32>
    %10 = arith.mulf %9, %9 : vector<8x128xf32>
    %11 = arith.mulf %9, %10 : vector<8x128xf32>
    %cst_7 = arith.constant 4.471500e-02 : f32
    %12 = vector.broadcast %cst_7 : f32 to vector<8x128xf32>
    %13 = arith.mulf %12, %11 : vector<8x128xf32>
    %14 = arith.addf %9, %13 : vector<8x128xf32>
    %cst_8 = arith.constant 0.797884583 : f32
    %15 = vector.broadcast %cst_8 : f32 to vector<8x128xf32>
    %16 = arith.mulf %15, %14 : vector<8x128xf32>
    %17 = math.tanh %16 : vector<8x128xf32>
    %cst_9 = arith.constant 1.000000e+00 : f32
    %18 = vector.broadcast %cst_9 : f32 to vector<8x128xf32>
    %19 = arith.addf %18, %17 : vector<8x128xf32>
    %cst_10 = arith.constant 5.000000e-01 : f32
    %20 = vector.broadcast %cst_10 : f32 to vector<8x128xf32>
    %21 = arith.mulf %20, %19 : vector<8x128xf32>
    %22 = arith.mulf %9, %21 : vector<8x128xf32>
    %c0_11 = arith.constant 0 : index
    %c0_12 = arith.constant 0 : index
    %23 = vector.load %arg8[%c0_11, %c0_12] : memref<8x32xf32, #tpu.memory_space<vmem>>, vector<8x32xf32>
    %24 = arith.truncf %22 : vector<8x128xf32> to vector<8x128xbf16>
    %c0_13 = arith.constant 0 : index
    %c0_14 = arith.constant 0 : index
    %25 = vector.load %arg5[%c0_13, %c0_14] : memref<128x32xbf16, #tpu.memory_space<vmem>>, vector<128x32xbf16>
    %cst_15 = arith.constant dense<0.000000e+00> : vector<8x32xf32>
    %26 = tpu.matmul %24, %25, %cst_15 {dimension_numbers = #tpu.dot_dimension_numbers<[1], [0], [0], [1], [0, 0, 1, 1], [], []>} : vector<8x128xbf16>, vector<128x32xbf16>, vector<8x32xf32> -> vector<8x32xf32>
    %27 = arith.addf %23, %26 : vector<8x32xf32>
    %c0_16 = arith.constant 0 : index
    %c0_17 = arith.constant 0 : index
    %28 = vector.load %arg8[%c0_16, %c0_17] : memref<8x32xf32, #tpu.memory_space<vmem>>, vector<8x32xf32>
    tpu.vector_store %arg8[%c0_16, %c0_17], %27 {strides = array<i32>} : memref<8x32xf32, #tpu.memory_space<vmem>>, vector<8x32xf32>,
    %c0_i32_18 = arith.constant 0 : i32
    %29 = arith.cmpi eq, %arg1, %c0_i32_18 : i32
    %30 = arith.extui %29 : i1 to i32
    %c0_i32_19 = arith.constant 0 : i32
    %31 = arith.cmpi ne, %30, %c0_i32_19 : i32
    scf.if %31 {
      %c0_20 = arith.constant 0 : index
      %c0_21 = arith.constant 0 : index
      %c0_22 = arith.constant 0 : index
      %32 = vector.load %arg2[%c0_20, %c0_21, %c0_22] : memref<1x8x32xbf16, #tpu.memory_space<vmem>>, vector<1x8x32xbf16>
      %33 = vector.shape_cast %32 : vector<1x8x32xbf16> to vector<8x32xbf16>
      %34 = arith.extf %33 : vector<8x32xbf16> to vector<8x32xf32>
      %c0_23 = arith.constant 0 : index
      %c0_24 = arith.constant 0 : index
      %35 = vector.load %arg8[%c0_23, %c0_24] : memref<8x32xf32, #tpu.memory_space<vmem>>, vector<8x32xf32>
      %36 = arith.addf %34, %35 : vector<8x32xf32>
      %c0_25 = arith.constant 0 : index
      %c0_26 = arith.constant 0 : index
      %37 = vector.load %arg6[%c0_25, %c0_26] : memref<1x32xf32, #tpu.memory_space<vmem>>, vector<1x32xf32>
      %38 = vector.broadcast %37 : vector<1x32xf32> to vector<8x32xf32>
      %39 = arith.addf %36, %38 : vector<8x32xf32>
      %cst_27 = arith.constant dense<0.000000e+00> : vector<8xf32>
      %40 = vector.multi_reduction <add>, %39, %cst_27 [1] : vector<8x32xf32> to vector<8xf32>
      %41 = vector.shape_cast %40 : vector<8xf32> to vector<8x1xf32>
      %cst_28 = arith.constant 3.200000e+01 : f32
      %42 = vector.broadcast %cst_28 : f32 to vector<8x1xf32>
      %43 = arith.divf %41, %42 : vector<8x1xf32>
      %44 = vector.broadcast %43 : vector<8x1xf32> to vector<8x32xf32>
      %45 = arith.subf %39, %44 : vector<8x32xf32>
      %46 = arith.mulf %45, %45 : vector<8x32xf32>
      %cst_29 = arith.constant dense<0.000000e+00> : vector<8xf32>
      %47 = vector.multi_reduction <add>, %46, %cst_29 [1] : vector<8x32xf32> to vector<8xf32>
      %48 = vector.shape_cast %47 : vector<8xf32> to vector<8x1xf32>
      %cst_30 = arith.constant 3.200000e+01 : f32
      %49 = vector.broadcast %cst_30 : f32 to vector<8x1xf32>
      %50 = arith.divf %48, %49 : vector<8x1xf32>
      %51 = vector.broadcast %43 : vector<8x1xf32> to vector<8x32xf32>
      %52 = arith.subf %39, %51 : vector<8x32xf32>
      %cst_31 = arith.constant 9.99999974E-6 : f32
      %53 = vector.broadcast %cst_31 : f32 to vector<8x1xf32>
      %54 = arith.addf %50, %53 : vector<8x1xf32>
      %55 = math.rsqrt %54 : vector<8x1xf32>
      %56 = vector.broadcast %55 : vector<8x1xf32> to vector<8x32xf32>
      %57 = arith.mulf %52, %56 : vector<8x32xf32>
      %58 = arith.truncf %57 : vector<8x32xf32> to vector<8x32xbf16>
      %c0_32 = arith.constant 0 : index
      %c0_33 = arith.constant 0 : index
      %c0_34 = arith.constant 0 : index
      %59 = vector.load %arg7[%c0_32, %c0_33, %c0_34] : memref<1x8x32xbf16, #tpu.memory_space<vmem>>, vector<1x8x32xbf16>
      %60 = vector.shape_cast %59 : vector<1x8x32xbf16> to vector<8x32xbf16>
      %61 = vector.shape_cast %58 : vector<8x32xbf16> to vector<1x8x32xbf16>
      tpu.vector_store %arg7[%c0_32, %c0_33, %c0_34], %61 {strides = array<i32>} : memref<1x8x32xbf16, #tpu.memory_space<vmem>>, vector<1x8x32xbf16>,
    } else {
    }
    return
  }
  func.func @transform_0(%arg0: i32, %arg1: i32) -> (i32, i32, i32) {
    %c0_i32 = arith.constant 0 : i32
    %c0_i32_0 = arith.constant 0 : i32
    %c0_i32_1 = arith.constant 0 : i32
    return %arg0, %c0_i32, %c0_i32_0 : i32, i32, i32
  }
  func.func @transform_1(%arg0: i32, %arg1: i32) -> (i32, i32) {
    %c0_i32 = arith.constant 0 : i32
    %c0_i32_0 = arith.constant 0 : i32
    return %c0_i32, %arg1 : i32, i32
  }
  func.func @transform_2(%arg0: i32, %arg1: i32) -> (i32, i32) {
    %c0_i32 = arith.constant 0 : i32
    %c0_i32_0 = arith.constant 0 : i32
    return %c0_i32, %arg1 : i32, i32
  }
  func.func @transform_3(%arg0: i32, %arg1: i32) -> (i32, i32) {
    %c0_i32 = arith.constant 0 : i32
    %c0_i32_0 = arith.constant 0 : i32
    return %arg1, %c0_i32 : i32, i32
  }
  func.func @transform_4(%arg0: i32, %arg1: i32) -> (i32, i32) {
    %c0_i32 = arith.constant 0 : i32
    %c0_i32_0 = arith.constant 0 : i32
    %c0_i32_1 = arith.constant 0 : i32
    return %c0_i32, %c0_i32_0 : i32, i32
  }
  func.func @transform_5(%arg0: i32, %arg1: i32) -> (i32, i32, i32) {
    %c0_i32 = arith.constant 0 : i32
    %c0_i32_0 = arith.constant 0 : i32
    %c0_i32_1 = arith.constant 0 : i32
    return %arg0, %c0_i32, %c0_i32_0 : i32, i32, i32
  }
}

module attributes {stable_mosaic.version = 11 : i64} {
  func.func @logits_kernel(%arg0: i32, %arg1: i32, %arg2: memref<1x7x32xbf16, #tpu.memory_space<vmem>>, %arg3: memref<64x32xbf16, #tpu.memory_space<vmem>>, %arg4: memref<1x64xf32, #tpu.memory_space<vmem>>, %arg5: memref<1x7x64xf32, #tpu.memory_space<vmem>>) attributes {dimension_semantics = [#tpu.dimension_semantics<parallel>, #tpu.dimension_semantics<parallel>], iteration_bounds = array<i64: 2, 1>, scalar_prefetch = 0 : i64, scratch_operands = 0 : i64, tpu.core_type = #tpu.core_type<tc>, window_params = [{transform_indices = @transform_0, window_bounds = array<i64: 1, 7, 32>}, {transform_indices = @transform_1, window_bounds = array<i64: 64, 32>}, {transform_indices = @transform_2, window_bounds = array<i64: 1, 64>}, {transform_indices = @transform_3, window_bounds = array<i64: 1, 7, 64>}]} {
    %c0 = arith.constant 0 : index
    %c0_0 = arith.constant 0 : index
    %c0_1 = arith.constant 0 : index
    %0 = vector.load %arg2[%c0, %c0_0, %c0_1] : memref<1x7x32xbf16, #tpu.memory_space<vmem>>, vector<1x7x32xbf16>
    %1 = vector.shape_cast %0 : vector<1x7x32xbf16> to vector<7x32xbf16>
    %c0_2 = arith.constant 0 : index
    %c0_3 = arith.constant 0 : index
    %2 = vector.load %arg3[%c0_2, %c0_3] : memref<64x32xbf16, #tpu.memory_space<vmem>>, vector<64x32xbf16>
    %cst = arith.constant dense<0.000000e+00> : vector<7x64xf32>
    %3 = tpu.matmul %1, %2, %cst {dimension_numbers = #tpu.dot_dimension_numbers<[1], [1], [0], [0], [0, 0, 1, 0], [], []>} : vector<7x32xbf16>, vector<64x32xbf16>, vector<7x64xf32> -> vector<7x64xf32>
    %c0_4 = arith.constant 0 : index
    %c0_5 = arith.constant 0 : index
    %4 = vector.load %arg4[%c0_4, %c0_5] : memref<1x64xf32, #tpu.memory_space<vmem>>, vector<1x64xf32>
    %5 = vector.broadcast %4 : vector<1x64xf32> to vector<7x64xf32>
    %6 = arith.addf %3, %5 : vector<7x64xf32>
    %c0_6 = arith.constant 0 : index
    %c0_7 = arith.constant 0 : index
    %c0_8 = arith.constant 0 : index
    %7 = vector.load %arg5[%c0_6, %c0_7, %c0_8] : memref<1x7x64xf32, #tpu.memory_space<vmem>>, vector<1x7x64xf32>
    %8 = vector.shape_cast %7 : vector<1x7x64xf32> to vector<7x64xf32>
    %9 = vector.shape_cast %6 : vector<7x64xf32> to vector<1x7x64xf32>
    tpu.vector_store %arg5[%c0_6, %c0_7, %c0_8], %9 {strides = array<i32>} : memref<1x7x64xf32, #tpu.memory_space<vmem>>, vector<1x7x64xf32>,
    return
  }
  func.func @transform_0(%arg0: i32, %arg1: i32) -> (i32, i32, i32) {
    %c0_i32 = arith.constant 0 : i32
    %c0_i32_0 = arith.constant 0 : i32
    %c0_i32_1 = arith.constant 0 : i32
    return %arg0, %c0_i32, %c0_i32_0 : i32, i32, i32
  }
  func.func @transform_1(%arg0: i32, %arg1: i32) -> (i32, i32) {
    %c0_i32 = arith.constant 0 : i32
    %c0_i32_0 = arith.constant 0 : i32
    return %arg1, %c0_i32 : i32, i32
  }
  func.func @transform_2(%arg0: i32, %arg1: i32) -> (i32, i32) {
    %c0_i32 = arith.constant 0 : i32
    %c0_i32_0 = arith.constant 0 : i32
    return %c0_i32, %arg1 : i32, i32
  }
  func.func @transform_3(%arg0: i32, %arg1: i32) -> (i32, i32, i32) {
    %c0_i32 = arith.constant 0 : i32
    %c0_i32_0 = arith.constant 0 : i32
    return %arg0, %c0_i32, %arg1 : i32, i32, i32
  }
}

</mosaic_0001>

<bundles_post_ra>
// kernel: gpt_pretrain_forward.8
= control target key start
LH: loop header
LB: loop body
LE: loop exit
PB: predicated region body
PF: predicated region fallthrough
CT: control target
= control target key end

     0   :  { %s509_s0 = inlined_call_operand.vmem [shape: s32[2,8], index: 0, kind: input, shape index: {}]   ;;  %s510_s1 = inlined_call_operand.vmem [shape: bf16[64,1,32], index: 1, kind: input, shape index: {}]   ;;  %s511_s2 = inlined_call_operand.vmem [shape: f32[8,1,32], index: 2, kind: input, shape index: {}]   ;;  %s512_s3 = inlined_call_operand.vmem [shape: bf16[2,8,1,32], index: 3, kind: output, shape index: {}]  }
   0x1   :  { %s8_s14 = sshll.u32 %s509_s0, 4  ;;  %s9_s14 = int_to_ptr.vmem [resolvable:$true] %s8_s14 }
   0x2   :  { %s377_s15 = scalar_lea.vmem %s9_s14, 32  ;;  %p382_p1 = scmp.lt.s32.totalorder %s9_s14, %s9_s14 }
   0x3   :  { %p378_p0 = scmp.ne.s32.totalorder %s9_s14, %s377_s15  ;;  %p383_p2 = scmp.lt.s32.totalorder %s377_s15, %s377_s15 }
   0x5   :  { %p384_p3 = por %p383_p2, %p382_p1 }
   0x7   :  { %p385_p4 = pnand %p384_p3, %p378_p0 }
   0x9   :  { %388 = shalt.err (!%p385_p4)  }
   0xa   :  { %s431_s16 = smov [#allocation3]  }
   0xb   :  { %11 = dma.vmem_to_smem %s9_s14, 32, %s431_s16, [#allocation2] }
   0xc   :  { %409 = dma.done.wait [#allocation2], 32 }
   0xd   :  { %410 = vsyncadd [#allocation2], 4294967264 }
   0xe   :  { %13 = sfence }
   0xf   :  { %s455_s17 = smov 0   ;;  %s457_s18 = smov 0  }
  0x10   :  { %s459_s19 = smov 0   ;;  %s461_s0 = smov 0  }
  0x11   :  { %s463_s20 = smov 0  }
  0x12 LB: > { %s28_s21 = sadd.s32 1, %s421_s19  ;;  %s31_s22 = sadd.s32 1, %s425_s0  ;;  %s429_s20 = sphi %s463_s20, %s19_s20   ;;  %s425_s0 = sphi %s461_s0, %s516_s0   ;;  %s421_s19 = sphi %s459_s19, %s515_s19   ;;  %s417_s18 = sphi %s457_s18, %s514_s18   ;;  %s413_s17 = sphi %s455_s17, %s513_s17  }
  0x13   : > { %p29_p5 = scmp.ge.s32.totalorder %s28_s21, 8  ;;  %p331_p6 = scmp.ge.s32.totalorder %s429_s20, 1 }
  0x14   : > { %p171_p7 = scmp.lt.s32.totalorder %s429_s20, 17 }
  0x15   : > { %s518_s21 = smov (%p29_p5, %s28_s21), 0  ;;  %s520_s22 = smov (!%p29_p5, %s31_s22), %s425_s0 }
  0x16   : > { %p172_p8 = pnand %p331_p6, %p171_p7  ;;  %p33_p9 = scmp.ge.s32.totalorder %s520_s22, 2 }
  0x17   : > { %s204_s23 = sshra.s32 (!%p172_p8), %s413_s17, 7  ;;  %s209_s24 = sand.u32 (!%p172_p8), 127, %s413_s17 }
  0x18   : > { %s522_s22 = smov (%p33_p9, %s520_s22), 0  ;;  %175 = sbr.rel (%p172_p8) target bundleno = 49 (0x31), region = 28 }
  0x19   : > { %s206_s25 = sadd.s32 (!%p172_p8), %s417_s18, %s204_s23  ;;  %p226_p10 = scmp.lt.s32.totalorder (!%p172_p8), %s417_s18, 1 }
  0x1a   : > { %s332_s26 = sshll.u32 (!%p172_p8), %s206_s25, 7  ;;  %p223_p11 = scmp.lt.s32.totalorder (!%p172_p8), %s413_s17, 7 }
  0x1b   : > { %s210_s27 = sadd.s32 (!%p172_p8), %s332_s26, %s209_s24 }
  0x1c   : > { %s211_s28 = sld [smem:[#allocation3 + %s210_s27]] (!%p172_p8) }
  0x1d   : > { %s524_s18 = smov (!%p226_p10, %s417_s18), 1  ;;  %s526_s17 = smov (!%p223_p11, %s413_s17), 7  ;;  %vm239_vm0 = vcmask 253952   ;;  %vm240_vm1 = vsmask.f32 256 }
  0x1e   : > { %s333_s29 = sshll.u32 %s524_s18, 3  ;;  %s225_s8 = scalar_lea.vmem %s511_s2, %s526_s17  ;;  %vm241_vm2 = vmand %vm239_vm0, %vm240_vm1 }
  0x1f   : > { %s231_s9 = sadd.s32 %s333_s29, %s526_s17  ;;  %v236_v2 = vld [vmem:[%s225_s8] sm:$0x1] }
  0x20   : > { %s232_s12 = scalar_lea.vmem %s512_s3, %s231_s9 }
  0x21   : > { %v242_v5 = vld [vmem:[%s232_s12] sm:$0x1] }
  0x22   : > { %p212_p12 = scmp.lt.s32.totalorder %s211_s28, 63 }
  0x24   : > { %s528_s28 = smov (!%p212_p12, %s211_s28), 63 }
  0x25   : > { %s214_s5 = scalar_lea.vmem %s510_s1, %s528_s28 }
  0x26   : > { %v233_v0 = vld [vmem:[%s214_s5] sm:$0x1] }
  0x27   : > { %v234_v1 = vunpack.c.l.bf16 %v233_v0 }
  0x29   : > { %v235_v3 = vmul.f32 0.17677669, %v234_v1 }
  0x2b   : > { %v237_v4 = vadd.f32 %v236_v2, %v235_v3 }
  0x2d   : > { %v238_v6 = vpack.c.bf16 %v237_v4, %v237_v4 }
  0x2f   : > { %v243_v7 = vsel %vm241_vm2, %v238_v6, %v242_v5 }
  0x30   : > { %244 = vst [vmem:[%s232_s12] sm:$0x1] %v243_v7 }
  0x31 PF: > { %s19_s20 = sadd.s32 1, %s429_s20   ;;  %s513_s17 = smov %s421_s19 }
  0x32   : > { %p16_p13 = scmp.ge.s32.totalorder %s19_s20, 18   ;;  %s514_s18 = smov %s425_s0 }
  0x33   : > { %s515_s19 = smov %s518_s21  ;;  %s516_s0 = smov %s522_s22 }
  0x34   :  { %18 = sbr.rel (!%p16_p13) target bundleno = 18 (0x12), region = 61 }

// kernel: gpt_pretrain_forward.10
= control target key start
LH: loop header
LB: loop body
LE: loop exit
PB: predicated region body
PF: predicated region fallthrough
CT: control target
= control target key end

     0   :  { %s438_s15 = smov 0   ;;  %s475_s0 = inlined_call_operand.vmem [shape: bf16[2,8,32], index: 0, kind: input, shape index: {}]   ;;  %s476_s1 = inlined_call_operand.vmem [shape: bf16[2,8,32], index: 1, kind: input, shape index: {}]   ;;  %s477_s2 = inlined_call_operand.vmem [shape: bf16[32,32], index: 2, kind: input, shape index: {}]   ;;  %s478_s3 = inlined_call_operand.vmem [shape: f32[1,32], index: 3, kind: input, shape index: {}]   ;;  %s479_s4 = inlined_call_operand.vmem [shape: bf16[2,8,32], index: 4, kind: output, shape index: {}]  }
   0x1 LB: > { %s364_s16 = sadd.s32 4294967295, %s409_s15   ;;  %p368_p0 = scmp.ge.s32.totalorder %s409_s15, 1  ;;  %s409_s15 = sphi %s438_s15, %s14_s15  }
   0x2   : > { %p170_p1 = scmp.lt.s32.totalorder %s409_s15, 3 }
   0x4   : > { %p171_p2 = pnand %p368_p0, %p170_p1 }
   0x5   : > { %p198_p3 = scmp.lt.s32.totalorder (!%p171_p2), %s364_s16, 1 }
   0x6   : > { %174 = sbr.rel (%p171_p2) target bundleno = 524 (0x20c), region = 36 }
   0xb   : > { %v399_v0 = vld [vmem:[%s477_s2 + $0x8] sm:$0xff]   ;;  %v411_v1 = vmov 0.0   ;;  %v400_v2 = vld [vmem:[%s477_s2] sm:$0xff]   ;;  %vm412_vm0 = vmmov 0   ;;  %s481_s16 = smov (!%p198_p3, %s364_s16), 1  ;;  %vm235_vm1 = vcmask 261120  }
   0xc   : > { %381 = vmatprep.subr.bf16.mxu0 %v411_v1  ;;  %385 = vmatprep.mubr.msk.bf16.mxu0 %vm412_vm0, %v411_v1  ;;  %s452_s21 = sshll.u32 %s481_s16, 2  ;;  %v372_v5 = vld [vmem:[%s478_s3] ss:$0 sm:$0xff]  ;;  %vm297_vm2 = vcmask 257024  }
   0xd   : > { %382 = vmatpush3.bf16.msra.mxu0 %v399_v0  ;;  %s201_s24 = scalar_lea.vmem %s475_s0, %s452_s21  ;;  %s205_s27 = scalar_lea.vmem %s476_s1, %s452_s21 }
   0xe   : > { %383 = vmatprep.subr.bf16.mxu0 %v411_v1  ;;  %v211_v3 = vld [vmem:[%s201_s24] sm:$0xf]  ;;  %s209_s6 = scalar_lea.vmem %s479_s4, %s452_s21 }
   0xf   : > { %v279_v4 = vld [vmem:[%s205_s27] sm:$0xf] }
  0x10   : > { %v280_v6 = vunpack.c.l.bf16 %v279_v4 }
  0x11   : > { %384 = vmatpush3.bf16.msra.mxu0 %v400_v2 }
  0x14   : > { %386 = vmatmul.mubr.msk.bf16.vlgmr.msra.gmra.mxu0 %vm235_vm1, %v211_v3 }
  0xd4   : > { %v273_v7 = vpop.f32.mrf.mxu0 }
  0xd5   : > { %v274_v8 = vadd.f32 %v372_v5, %v273_v7 }
  0xd6   : > { %v387_v9 = vpop.f32.mrf.mxu0 }
  0xd7   : > { %v281_v10 = vadd.f32 %v280_v6, %v274_v8 }
  0xd8   : > { %v276_v11 = vpop.f32.mrf.mxu0 }
  0xd9   : > { %v282_v12 = vsel %vm235_vm1, %v281_v10, 0.0 }
  0xda   : > { %283 = vadd.xlane.f32.xlu0 %v282_v12  ;;  %v388_v13 = vpop.f32.mrf.mxu0 }
 0x163   : > { %v284_v14 = vpop.xlane.xlu0 %283 }
 0x164   : > { %v286_v15 = vmul.f32 0.03125, %v284_v14 }
 0x166   : > { %v287_v16 = vsub.f32 %v281_v10, %v286_v15 }
 0x168   : > { %v288_v17 = vmul.f32 %v287_v16, %v287_v16 }
 0x16a   : > { %v289_v18 = vsel %vm235_vm1, %v288_v17, 0.0 }
 0x16b   : > { %290 = vadd.xlane.f32.xlu0 %v289_v18 }
 0x1f4   : > { %v291_v19 = vpop.xlane.xlu0 %290 }
 0x1f5   : > { %v292_v20 = vmul.f32 0.03125, %v291_v19 }
 0x1f7   : > { %v293_v21 = vadd.f32 1e-05, %v292_v20 }
 0x1f9   : > { %401 = vrsqrt.f32 %v293_v21 }
 0x206   : > { %v402_v22 = vpop.eup %401 }
 0x207   : > { %v295_v23 = vmul.f32 %v402_v22, %v287_v16 }
 0x209   : > { %v296_v24 = vpack.c.bf16 %v295_v23, %v295_v23 }
 0x20b   : > { %298 = vst.msk [vmem:[%s209_s6] sm:$0xf] %vm297_vm2, %v296_v24 }
 0x20c PF: > { %s14_s15 = sadd.s32 1, %s409_s15  }
 0x20d   : > { %p11_p4 = scmp.ge.s32.totalorder %s14_s15, 4  }
 0x20f   :  { %13 = sbr.rel (!%p11_p4) target bundleno = 1 (0x1), region = 69 }

// kernel: gpt_pretrain_forward.9
= control target key start
LH: loop header
LB: loop body
LE: loop exit
PB: predicated region body
PF: predicated region fallthrough
CT: control target
= control target key end

     0   :  { %s740_s15 = smov 0   ;;  %s742_s16 = smov 0   ;;  %s815_s0 = inlined_call_operand.vmem [shape: bf16[2,8,32], index: 0, kind: input, shape index: {}]   ;;  %s816_s1 = inlined_call_operand.vmem [shape: f32[2,1,8], index: 1, kind: input, shape index: {}]   ;;  %s817_s2 = inlined_call_operand.vmem [shape: bf16[4,32,24], index: 2, kind: input, shape index: {}]   ;;  %s818_s3 = inlined_call_operand.vmem [shape: f32[4,1,24], index: 3, kind: input, shape index: {}]   ;;  %s819_s4 = inlined_call_operand.vmem [shape: bf16[2,4,8,8], index: 4, kind: output, shape index: {}]  }
   0x1   :  { %s744_s17 = smov 0   ;;  %s746_s18 = smov 0  }
   0x2   :  { %s748_s19 = smov 0  }
   0x3 LB: > { %s23_s20 = sadd.s32 1, %s700_s17  ;;  %s26_s21 = sadd.s32 1, %s704_s18  ;;  %s708_s19 = sphi %s748_s19, %s14_s19   ;;  %s704_s18 = sphi %s746_s18, %s823_s18   ;;  %s700_s17 = sphi %s744_s17, %s822_s17   ;;  %s696_s16 = sphi %s742_s16, %s821_s16   ;;  %s692_s15 = sphi %s740_s15, %s820_s15  }
   0x4   : > { %p24_p0 = scmp.ge.s32.totalorder %s23_s20, 4  ;;  %p577_p1 = scmp.ge.s32.totalorder %s708_s19, 1 }
   0x5   : > { %p201_p2 = scmp.lt.s32.totalorder %s708_s19, 9 }
   0x6   : > { %s825_s20 = smov (%p24_p0, %s23_s20), 0  ;;  %s827_s21 = smov (!%p24_p0, %s26_s21), %s704_s18 }
   0x7   : > { %p202_p3 = pnand %p577_p1, %p201_p2  ;;  %p28_p4 = scmp.ge.s32.totalorder %s827_s21, 2 }
   0x8   : > { %p247_p5 = scmp.lt.s32.totalorder (!%p202_p3), %s692_s15, 3  ;;  %p240_p6 = scmp.lt.s32.totalorder (!%p202_p3), %s696_s16, 1 }
   0x9   : > { %s829_s21 = smov (%p28_p4, %s827_s21), 0  ;;  %205 = sbr.rel (%p202_p3) target bundleno = 1054 (0x41e), region = 36 }
   0xa   : > { %s712_s8 = smov (!%p202_p3), 120   ;;  %s714_s12 = smov (!%p202_p3), 112  }
   0xe   : > { %v710_v0 = vmov 0.0   ;;  %vm711_vm0 = vmmov 0   ;;  %s831_s15 = smov (!%p247_p5, %s692_s15), 3  ;;  %s833_s16 = smov (!%p240_p6, %s696_s16), 1  ;;  %vm288_vm1 = vcmask 261120   ;;  %vm336_vm2 = vcmask 64512  }
   0xf   : > { %599 = vmatprep.subr.bf16.mxu0 %v710_v0  ;;  %603 = vmatprep.mubr.msk.bf16.mxu0 %vm711_vm0, %v710_v0  ;;  %s591_s22 = sshll.u32 %s831_s15, 4  ;;  %s578_s26 = sshll.u32 %s833_s16, 2  ;;  %v384_v13 = vlaneseq  ;;  %v713_v17 = vmov 0   ;;  %vm416_vm7 = vcmask 1043456   ;;  %vm461_vm8 = vcmask 60416  }
  0x10   : > { %607 = vmatprep.subr.bf16.mxu1 %v710_v0  ;;  %609 = vmatprep.mubr.msk.bf16.mxu1 %vm711_vm0, %v710_v0  ;;  %s251_s25 = scalar_lea.vmem %s817_s2, %s591_s22  ;;  %s778_s27 = sadd.s32 %s578_s26, %s831_s15 }
  0x11   : > { %v664_v1 = vld [vmem:[%s251_s25 + $0x8] sm:$0xff]   ;;  %v665_v2 = vld [vmem:[%s251_s25] sm:$0xff]   ;;  %s243_s30 = scalar_lea.vmem %s815_s0, %s578_s26  ;;  %s254_s7 = scalar_lea.vmem %s818_s3, %s831_s15  ;;  %v385_v15 = vshrl.u32 %v384_v13, 7  ;;  %v387_v19 = vand.u32 127, %v384_v13 }
  0x12   : > { %600 = vmatpush3.bf16.msra.mxu0 %v664_v1  ;;  %v264_v3 = vld [vmem:[%s243_s30] sm:$0xf]  ;;  %s246_s11 = scalar_lea.vmem %s816_s1, %s833_s16  ;;  %s582_s13 = sshll.u32 %s778_s27, 2 }
  0x13   : > { %601 = vmatprep.subr.bf16.mxu0 %v710_v0  ;;  %v583_v4 = vld [vmem:[%s254_s7] ss:$0 sm:$0xff]  ;;  %v394_v16 = vsub.s32 0, %v385_v15  ;;  %vm388_vm4 = vcmp.gt.s32.totalorder %v387_v19, %v385_v15  ;;  %s262_s16 = scalar_lea.vmem %s819_s4, %s582_s13 }
  0x14   : > { %v389_v14 = vld [vmem:[%s246_s11] sm:$0x1] }
  0x15   : > { %vm390_vm3 = vcmp.gt.f32.partialorder %v389_v14, 0.5 }
  0x16   : > { %602 = vmatpush3.bf16.msra.mxu0 %v665_v2  ;;  %v391_v18 = vsel %vm390_vm3, 1, %v713_v17 }
  0x17   : > { %613 = vmatprep.subr.bf16.mxu0 %v710_v0  ;;  %v395_v20 = vrot.slane %v391_v18, %v394_v16 }
  0x19   : > { %604 = vmatmul.mubr.msk.bf16.vlgmr.msra.gmra.mxu0 %vm288_vm1, %v264_v3  ;;  %vm396_vm5 = vcmp.eq.s32.totalorder %v395_v20, 1 }
  0x1a   : > { %615 = vmatprep.mubr.msk.bf16.mxu0 %vm711_vm0, %v710_v0  ;;  %vm397_vm6 = vmor %vm388_vm4, %vm396_vm5 }
  0xd9   : > { %v326_v5 = vpop.f32.mrf.mxu0 }
  0xda   : > { %v327_v6 = vadd.f32 %v583_v4, %v326_v5 }
  0xdb   : > { %v605_v7 = vpop.f32.mrf.mxu0 }
  0xdc   : > { %v332_v8 = vpack.c.bf16 %v327_v6, %v327_v6 }
  0xdd   : > { %v329_v9 = vpop.f32.mrf.mxu0 }
  0xde   : > { %334 = vrot.lane.b32.xlu0 %v332_v8, %s712_s8 }
  0xdf   : > { %v606_v10 = vpop.f32.mrf.mxu0 }
 0x150   : > { %v335_v11 = vpop.permute.xlu0 %334 }
 0x151   : > { %v341_v12 = vsel %vm336_vm2, %v335_v11, 0 }
 0x152   : > { %608 = vmatpush3.bf16.xpose.msra.mxu1 %v341_v12 }
 0x159   : > { %610 = vmatmul.mubr.msk.bf16.vlgmr.msra.gmra.mxu1 %vm336_vm2, %v332_v8 }
 0x219   : > { %v377_v21 = vpop.f32.mrf.mxu1 }
 0x21a   : > { %v383_v22 = vmul.f32 0.015625, %v377_v21 }
 0x21b   : > { %v611_v23 = vpop.f32.mrf.mxu1 }
 0x21c   : > { %v398_v24 = vsel %vm397_vm6, -1e+30, %v383_v22 }
 0x21d   : > { %v380_v25 = vpop.f32.mrf.mxu1  ;;  %v399_v26 = vsel %vm336_vm2, %v398_v24, -inf }
 0x21e   : > { %400 = vmax.xlane.f32.xlu0 %v399_v26 }
 0x21f   : > { %v612_v27 = vpop.f32.mrf.mxu1 }
 0x2a7   : > { %v401_v28 = vpop.xlane.xlu0 %400 }
 0x2a8   : > { %v402_v29 = vsub.f32 %v398_v24, %v401_v28 }
 0x2aa   : > { %v403_v30 = vmul.f32 1.442695, %v402_v29 }
 0x2ac   : > { %666 = vpow2.f32 %v403_v30 }
 0x2b9   : > { %v667_v31 = vpop.eup %666 }
 0x2ba   : > { %v405_v32 = vsel %vm336_vm2, %v667_v31, 0.0 }
 0x2bb   : > { %406 = vadd.xlane.f32.xlu1 %v405_v32 }
 0x2cc   : > { %411 = vrot.lane.b32.xlu1 %v332_v8, %s714_s12 }
 0x344   : > { %v407_v33 = vpop.xlane.xlu1 %406 }
 0x345   : > { %668 = vrcp.f32 %v407_v33 }
 0x348   : > { %v412_v34 = vpop.permute.xlu1 %411 }
 0x349   : > { %v418_v35 = vsel %vm416_vm7, %v412_v34, 0 }
 0x34a   : > { %614 = vmatpush3.bf16.msra.mxu0 %v418_v35 }
 0x352   : > { %v669_v36 = vpop.eup %668 }
 0x353   : > { %v409_v37 = vmul.f32 %v669_v36, %v667_v31 }
 0x355   : > { %v410_v38 = vpack.c.bf16 %v409_v37, %v409_v37 }
 0x357   : > { %616 = vmatmul.mubr.msk.bf16.vlgmr.msra.gmra.mxu0 %vm336_vm2, %v410_v38 }
 0x417   : > { %v454_v39 = vpop.f32.mrf.mxu0 }
 0x418   : > { %v460_v40 = vpack.c.bf16 %v454_v39, %v454_v39 }
 0x419   : > { %v617_v41 = vpop.f32.mrf.mxu0 }
 0x41a   : > { %462 = vst.msk [vmem:[%s262_s16] sm:$0xf] %vm461_vm8, %v460_v40 }
 0x41b   : > { %v457_v42 = vpop.f32.mrf.mxu0 }
 0x41d   : > { %v618_v43 = vpop.f32.mrf.mxu0 }
 0x41e PF: > { %s14_s19 = sadd.s32 1, %s708_s19   ;;  %s820_s15 = smov %s700_s17 }
 0x41f   : > { %p11_p7 = scmp.ge.s32.totalorder %s14_s19, 10   ;;  %s821_s16 = smov %s704_s18 }
 0x420   : > { %s822_s17 = smov %s825_s20  ;;  %s823_s18 = smov %s829_s21 }
 0x421   :  { %13 = sbr.rel (!%p11_p7) target bundleno = 3 (0x3), region = 75 }

// kernel: gpt_pretrain_forward.11
= control target key start
LH: loop header
LB: loop body
LE: loop exit
PB: predicated region body
PF: predicated region fallthrough
CT: control target
= control target key end

     0   :  { %s774_s18 = smov 0   ;;  %s776_s19 = smov 0   ;;  %s859_s0 = inlined_call_operand.vmem [shape: bf16[2,8,32], index: 0, kind: input, shape index: {}]   ;;  %s860_s1 = inlined_call_operand.vmem [shape: bf16[32,128], index: 1, kind: input, shape index: {}]   ;;  %s861_s2 = inlined_call_operand.vmem [shape: f32[1,128], index: 2, kind: input, shape index: {}]   ;;  %s862_s3 = inlined_call_operand.vmem [shape: bf16[128,32], index: 3, kind: input, shape index: {}]   ;;  %s863_s4 = inlined_call_operand.vmem [shape: f32[1,32], index: 4, kind: input, shape index: {}]   ;;  %s864_s5 = inlined_call_operand.vmem [shape: bf16[2,8,32], index: 5, kind: output, shape index: {}]  }
   0x1   :  { %s778_s20 = smov 0  }
   0x2 LB: > { %s27_s21 = sadd.s32 1, %s736_s19  ;;  %p620_p0 = scmp.ge.s32.totalorder %s740_s20, 1  ;;  %s740_s20 = sphi %s778_s20, %s15_s20   ;;  %s736_s19 = sphi %s776_s19, %s866_s19   ;;  %s732_s18 = sphi %s774_s18, %s865_s18  }
   0x3   : > { %p29_p1 = scmp.ge.s32.totalorder %s27_s21, 2  ;;  %p226_p2 = scmp.lt.s32.totalorder %s740_s20, 3 }
   0x5   : > { %s868_s21 = smov (%p29_p1, %s27_s21), 0  ;;  %p227_p3 = pnand %p620_p0, %p226_p2 }
   0x6   : > { %p264_p4 = scmp.lt.s32.totalorder (!%p227_p3), %s732_s18, 1 }
   0x7   : > { %230 = sbr.rel (%p227_p3) target bundleno = 762 (0x2fa), region = 40 }
   0xc   : > { %v704_v0 = vld [vmem:[%s860_s1 + $0x8] sm:$0xff]   ;;  %v742_v1 = vmov 0.0   ;;  %v705_v2 = vld [vmem:[%s860_s1] sm:$0xff]   ;;  %vm743_vm0 = vmmov 0   ;;  %vm290_vm1 = vcmask 261120   ;;  %s870_s18 = smov (!%p264_p4, %s732_s18), 1 }
   0xd   : > { %650 = vmatprep.subr.bf16.mxu0 %v742_v1  ;;  %658 = vmatprep.subr.bf16.mxu1 %v742_v1  ;;  %291 = vst.msk [vmem:[#allocation2] sm:$0xff] %vm290_vm1, %v742_v1  ;;  %s621_s26 = sshll.u32 %s870_s18, 2  ;;  %v706_v4 = vld [vmem:[%s862_s3 + $0x38] sm:$0xff]   ;;  %v707_v5 = vld [vmem:[%s862_s3 + $0x30] sm:$0xff]   ;;  %v708_v6 = vld [vmem:[%s862_s3 + $0x28] sm:$0xff]   ;;  %vm507_vm2 = vcmask 257024  }
   0xe   : > { %651 = vmatpush3.bf16.msra.mxu0 %v704_v0  ;;  %654 = vmatprep.mubr.msk.bf16.mxu0 %vm743_vm0, %v742_v1  ;;  %s807_s29 = scalar_lea.vmem %s859_s0, %s621_s26  ;;  %v709_v7 = vld [vmem:[%s862_s3 + $0x20] sm:$0xff]   ;;  %v710_v8 = vld [vmem:[%s862_s3 + $0x18] sm:$0xff]   ;;  %v711_v9 = vld [vmem:[%s862_s3 + $0x10] sm:$0xff]   ;;  %s284_s7 = scalar_lea.vmem %s864_s5, %s621_s26 }
   0xf   : > { %652 = vmatprep.subr.bf16.mxu0 %v742_v1  ;;  %674 = vmatprep.mubr.msk.bf16.mxu1 %vm743_vm0, %v742_v1  ;;  %v292_v3 = vld [vmem:[%s807_s29] sm:$0xf]  ;;  %v712_v10 = vld [vmem:[%s862_s3 + $0x8] sm:$0xff]  }
  0x10   : > { %659 = vmatpush3.bf16.msra.mxu1 %v706_v4  ;;  %v713_v11 = vld [vmem:[%s862_s3] sm:$0xff]  }
  0x11   : > { %660 = vmatprep.subr.bf16.mxu1 %v742_v1  ;;  %v623_v12 = vld [vmem:[%s861_s2] ss:$0 sm:$0xff] }
  0x12   : > { %653 = vmatpush3.bf16.msra.mxu0 %v705_v2  ;;  %v480_v32 = vld [vmem:[%s807_s29] sm:$0xf] }
  0x13   : > { %v481_v35 = vunpack.c.l.bf16 %v480_v32  ;;  %v635_v37 = vld [vmem:[%s863_s4] ss:$0 sm:$0xff] }
  0x14   : > { %661 = vmatpush3.bf16.msra.mxu1 %v707_v5  ;;  %v369_v28 = vld [vmem:[#allocation2] sm:$0xff] }
  0x15   : > { %655 = vmatmul.mubr.msk.bf16.vlgmr.msra.gmra.mxu0 %vm290_vm1, %v292_v3  ;;  %662 = vmatprep.subr.bf16.mxu1 %v742_v1 }
  0x18   : > { %663 = vmatpush3.bf16.msra.mxu1 %v708_v6 }
  0x19   : > { %664 = vmatprep.subr.bf16.mxu1 %v742_v1 }
  0x1c   : > { %665 = vmatpush3.bf16.msra.mxu1 %v709_v7 }
  0x1d   : > { %666 = vmatprep.subr.bf16.mxu1 %v742_v1 }
  0x20   : > { %667 = vmatpush3.bf16.msra.mxu1 %v710_v8 }
  0x21   : > { %668 = vmatprep.subr.bf16.mxu1 %v742_v1 }
  0x24   : > { %669 = vmatpush3.bf16.msra.mxu1 %v711_v9 }
  0x25   : > { %670 = vmatprep.subr.bf16.mxu1 %v742_v1 }
  0x28   : > { %671 = vmatpush3.bf16.msra.mxu1 %v712_v10 }
  0x29   : > { %672 = vmatprep.subr.bf16.mxu1 %v742_v1 }
  0x2c   : > { %673 = vmatpush3.bf16.msra.mxu1 %v713_v11 }
  0xd5   : > { %v354_v13 = vpop.f32.mrf.mxu0 }
  0xd6   : > { %v355_v14 = vadd.f32 %v623_v12, %v354_v13 }
  0xd7   : > { %v656_v15 = vpop.f32.mrf.mxu0 }
  0xd8   : > { %v360_v16 = vmul.f32 %v355_v14, %v355_v14 }
  0xd9   : > { %v357_v17 = vpop.f32.mrf.mxu0 }
  0xda   : > { %v361_v18 = vmul.f32 %v360_v16, %v355_v14 }
  0xdb   : > { %v657_v19 = vpop.f32.mrf.mxu0 }
  0xdc   : > { %v362_v20 = vmul.f32 0.044715, %v361_v18 }
  0xde   : > { %v363_v21 = vadd.f32 %v362_v20, %v355_v14 }
  0xe0   : > { %v364_v22 = vmul.f32 0.7978846, %v363_v21 }
  0xe2   : > { %714 = vtanh.f32 %v364_v22 }
  0xef   : > { %v715_v23 = vpop.eup %714 }
  0xf0   : > { %v366_v24 = vadd.f32 1.0, %v715_v23 }
  0xf2   : > { %v367_v25 = vmul.f32 0.5, %v366_v24 }
  0xf4   : > { %v368_v26 = vmul.f32 %v367_v25, %v355_v14 }
  0xf6   : > { %v370_v27 = vpack.c.bf16 %v368_v26, %v368_v26 }
  0xf8   : > { %675 = vmatmul.mubr.bf16.vlgmr.msra.gmra.mxu1 %v370_v27 }
 0x1b8   : > { %v469_v29 = vpop.f32.mrf.mxu1 }
 0x1b9   : > { %v475_v30 = vadd.f32 %v469_v29, %v369_v28 }
 0x1ba   : > { %v676_v31 = vpop.f32.mrf.mxu1 }
 0x1bb   : > { %476 = vst.msk [vmem:[#allocation2] sm:$0xff] %vm290_vm1, %v475_v30 }
 0x1bc   : > { %v472_v33 = vpop.f32.mrf.mxu1 }
 0x1be   : > { %v677_v34 = vpop.f32.mrf.mxu1 }
 0x1c2   : > { %v482_v36 = vld [vmem:[#allocation2] sm:$0xff] }
 0x1c3   : > { %v483_v38 = vadd.f32 %v482_v36, %v481_v35 }
 0x1c5   : > { %v491_v39 = vadd.f32 %v635_v37, %v483_v38 }
 0x1c7   : > { %v492_v40 = vsel %vm290_vm1, %v491_v39, 0.0 }
 0x1c8   : > { %493 = vadd.xlane.f32.xlu0 %v492_v40 }
 0x251   : > { %v494_v41 = vpop.xlane.xlu0 %493 }
 0x252   : > { %v496_v42 = vmul.f32 0.03125, %v494_v41 }
 0x254   : > { %v497_v43 = vsub.f32 %v491_v39, %v496_v42 }
 0x256   : > { %v498_v44 = vmul.f32 %v497_v43, %v497_v43 }
 0x258   : > { %v499_v45 = vsel %vm290_vm1, %v498_v44, 0.0 }
 0x259   : > { %500 = vadd.xlane.f32.xlu0 %v499_v45 }
 0x2e2   : > { %v501_v46 = vpop.xlane.xlu0 %500 }
 0x2e3   : > { %v502_v47 = vmul.f32 0.03125, %v501_v46 }
 0x2e5   : > { %v503_v48 = vadd.f32 1e-05, %v502_v47 }
 0x2e7   : > { %716 = vrsqrt.f32 %v503_v48 }
 0x2f4   : > { %v717_v49 = vpop.eup %716 }
 0x2f5   : > { %v505_v50 = vmul.f32 %v717_v49, %v497_v43 }
 0x2f7   : > { %v506_v51 = vpack.c.bf16 %v505_v50, %v505_v50 }
 0x2f9   : > { %508 = vst.msk [vmem:[%s284_s7] sm:$0xf] %vm507_vm2, %v506_v51 }
 0x2fa PF: > { %s15_s20 = sadd.s32 1, %s740_s20   ;;  %s865_s18 = smov %s736_s19 }
 0x2fb   : > { %p12_p5 = scmp.ge.s32.totalorder %s15_s20, 4   ;;  %s866_s19 = smov %s868_s21 }
 0x2fd   :  { %14 = sbr.rel (!%p12_p5) target bundleno = 2 (0x2), region = 87 }

// kernel: gpt_pretrain_forward.15
= control target key start
LH: loop header
LB: loop body
LE: loop exit
PB: predicated region body
PF: predicated region fallthrough
CT: control target
= control target key end

     0   :  { %s526_s12 = smov 0   ;;  %s528_s13 = smov 0   ;;  %s579_s0 = inlined_call_operand.vmem [shape: bf16[2,7,32], index: 0, kind: input, shape index: {}]   ;;  %s580_s1 = inlined_call_operand.vmem [shape: bf16[64,32], index: 1, kind: input, shape index: {}]   ;;  %s581_s2 = inlined_call_operand.vmem [shape: f32[1,64], index: 2, kind: input, shape index: {}]   ;;  %s582_s3 = inlined_call_operand.vmem [shape: f32[2,7,64], index: 3, kind: output, shape index: {}]  }
   0x1   :  { %s530_s14 = smov 0  }
   0x2 LB: > { %s25_s15 = sadd.s32 1, %s498_s13  ;;  %p422_p0 = scmp.ge.s32.totalorder %s502_s14, 1  ;;  %s502_s14 = sphi %s530_s14, %s13_s14   ;;  %s498_s13 = sphi %s528_s13, %s584_s13   ;;  %s494_s12 = sphi %s526_s12, %s583_s12  }
   0x3   : > { %p27_p1 = scmp.ge.s32.totalorder %s25_s15, 2  ;;  %p169_p2 = scmp.lt.s32.totalorder %s502_s14, 3 }
   0x5   : > { %s586_s15 = smov (%p27_p1, %s25_s15), 0  ;;  %p170_p3 = pnand %p422_p0, %p169_p2 }
   0x6   : > { %p202_p4 = scmp.lt.s32.totalorder (!%p170_p3), %s494_s12, 1 }
   0x7   : > { %173 = sbr.rel (%p170_p3) target bundleno = 244 (0xf4), region = 32 }
   0xc   : > { %v476_v0 = vld [vmem:[%s580_s1 + $0x18] sm:$0xff]   ;;  %v504_v1 = vmov 0.0   ;;  %vm259_vm0 = vcmask 261120   ;;  %v477_v3 = vld [vmem:[%s580_s1 + $0x10] sm:$0xff]   ;;  %vm505_vm1 = vmmov 0   ;;  %v478_v5 = vld [vmem:[%s580_s1 + $0x8] sm:$0xff]  }
   0xd   : > { %438 = vmatprep.subr.bf16.mxu0 %v504_v1  ;;  %v273_v2 = vsel %vm259_vm0, %v476_v0, 0  ;;  %446 = vmatprep.mubr.msk.bf16.mxu0 %vm505_vm1, %v504_v1  ;;  %v270_v4 = vsel %vm259_vm0, %v477_v3, 0  ;;  %v267_v6 = vsel %vm259_vm0, %v478_v5, 0  ;;  %v479_v7 = vld [vmem:[%s580_s1] sm:$0xff]   ;;  %s588_s12 = smov (!%p202_p4, %s494_s12), 1  ;;  %vm315_vm2 = vcmask 522240  }
   0xe   : > { %439 = vmatpush3.bf16.xpose.msra.mxu0 %v273_v2  ;;  %v264_v8 = vsel %vm259_vm0, %v479_v7, 0  ;;  %s423_s24 = sshll.u32 %s588_s12, 2  ;;  %s424_s28 = sshll.u32 %s588_s12, 3  ;;  %v425_v10 = vld [vmem:[%s581_s2] ss:$0 sm:$0xff] }
   0xf   : > { %440 = vmatprep.subr.bf16.mxu0 %v504_v1  ;;  %s205_s27 = scalar_lea.vmem %s579_s0, %s423_s24  ;;  %s221_s6 = scalar_lea.vmem %s582_s3, %s424_s28 }
  0x10   : > { %v223_v9 = vld [vmem:[%s205_s27] sm:$0xf] }
  0x16   : > { %441 = vmatpush3.bf16.xpose.msra.mxu0 %v270_v4 }
  0x17   : > { %442 = vmatprep.subr.bf16.mxu0 %v504_v1 }
  0x1e   : > { %443 = vmatpush3.bf16.xpose.msra.mxu0 %v267_v6 }
  0x1f   : > { %444 = vmatprep.subr.bf16.mxu0 %v504_v1 }
  0x26   : > { %445 = vmatpush3.bf16.xpose.msra.mxu0 %v264_v8 }
  0x2d   : > { %447 = vmatmul.mubr.msk.bf16.vlgmr.msra.gmra.mxu0 %vm259_vm0, %v223_v9 }
  0xed   : > { %v309_v11 = vpop.f32.mrf.mxu0 }
  0xee   : > { %v310_v12 = vadd.f32 %v425_v10, %v309_v11 }
  0xef   : > { %v448_v13 = vpop.f32.mrf.mxu0 }
  0xf0   : > { %316 = vst.msk [vmem:[%s221_s6] sm:$0x7f] %vm315_vm2, %v310_v12 }
  0xf1   : > { %v312_v14 = vpop.f32.mrf.mxu0 }
  0xf3   : > { %v449_v15 = vpop.f32.mrf.mxu0 }
  0xf4 PF: > { %s13_s14 = sadd.s32 1, %s502_s14   ;;  %s583_s12 = smov %s498_s13 }
  0xf5   : > { %p10_p5 = scmp.ge.s32.totalorder %s13_s14, 4   ;;  %s584_s13 = smov %s586_s15 }
  0xf7   :  { %12 = sbr.rel (!%p10_p5) target bundleno = 2 (0x2), region = 68 }

</bundles_post_ra>
